<compile_context>
chip_gen: v5e
topology: v5e:2x2
jax: 0.10.0
libtpu: 0.0.40
codegen_flags: <defaults>
</compile_context>

<pallas_src>
import jax
import jax.numpy as jnp
from jax.experimental import pallas as pl
from jax.experimental.pallas import tpu as pltpu


# ---------------------------------------------------------------------------
# Kernel
# ---------------------------------------------------------------------------
def multi_trait_kernel(doc_ref, chunk_ref, hr_ref,
                       wq2_ref, wkv_ref, p2_ref, wfused_ref, whr_ref, bias_ref,
                       out_ref):
    doc = doc_ref[...]            # (tb, H)      f32
    chunk = chunk_ref[...]        # (tb, S, H)   f32
    tb, S, H = chunk.shape
    H2 = wkv_ref.shape[1]         # 2H

    chunk2 = chunk.reshape(tb * S, H)

    # Query projection, zero-padded to 2H lanes (bias row 0 = [bq | 0]).
    q2 = (jnp.dot(doc, wq2_ref[...], preferred_element_type=jnp.float32)
          + bias_ref[0:1, :])                                             # (tb, 2H)

    # Fused K|V projection (k-bias dropped: softmax-invariant; v-bias folded into bias row 1).
    kv = jnp.dot(chunk2, wkv_ref[...],
                 preferred_element_type=jnp.float32).reshape(tb, S, H2)   # (tb, S, 2H)

    # Per-head logits broadcast across every (k and v) lane of the head.
    # Softmax scale is folded into P2, so this single matmul replaces the
    # old lane-sparse (.., nh) round trip.
    qk = q2[:, None, :] * kv                                              # (tb, S, 2H)
    logits = jnp.dot(qk.reshape(tb * S, H2), p2_ref[...],
                     preferred_element_type=jnp.float32).reshape(tb, S, H2)

    # softmax over the chunk/sequence axis, lane-dense at 2H width
    m = jnp.max(logits, axis=1, keepdims=True)
    p = jnp.exp(logits - m)
    denom = jnp.sum(p, axis=1, keepdims=True)
    probs = p / denom                                                     # (tb, S, 2H)

    # Attention output lives in the v-half of the lanes; the k-half is junk that the
    # zero-padded fused weight multiplies out.
    attn2 = jnp.sum(probs * kv, axis=1)                                   # (tb, 2H)

    H_out = out_ref.shape[-1]
    y = (jnp.dot(attn2, wfused_ref[...], preferred_element_type=jnp.float32)
         + jnp.dot(hr_ref[...], whr_ref[...], preferred_element_type=jnp.float32)
         + bias_ref[1:2, :H_out])
    # Dropout(p=0.1) -> identity (eval mode)
    out_ref[...] = jnp.maximum(y, 0.0).astype(out_ref.dtype)


# ---------------------------------------------------------------------------
# Static parameter folding (done once; weights are constants w.r.t. the forward)
# ---------------------------------------------------------------------------
def prepare_params(params, num_heads, hidden_dim):
    H = hidden_dim
    hd = H // num_heads
    hp = jax.lax.Precision.HIGHEST

    # q projection, pre-transposed and zero-padded to 2H output lanes
    wq_t = params["wq"].T                                                  # (H, H)
    wq2_t = jnp.concatenate([wq_t, jnp.zeros_like(wq_t)], axis=1)          # (H, 2H)
    bq2 = jnp.concatenate([params["bq"], jnp.zeros_like(params["bq"])], 1) # (1, 2H)

    # fused, pre-transposed K|V projection (no biases: bk dropped, bv folded below)
    wkv_t = jnp.concatenate([params["wk"].T, params["wv"].T], axis=1)      # (H, 2H)

    # block-diagonal per-head broadcast-sum matrix; softmax scale folded in.
    # P2[e, f] = scale iff e is a k-lane and e, f belong to the same head.
    lane = jnp.arange(2 * H)
    head = (lane % H) // hd
    P2 = ((lane[:, None] < H) & (head[:, None] == head[None, :])).astype(jnp.float32)
    P2 = P2 * (1.0 / (hd ** 0.5))                                          # (2H, 2H)

    # fold attention out-projection into the MLP's cross block; zero-pad k-half rows
    w_cross_t = jnp.dot(params["wo"].T, params["wm_c"].T, precision=hp)    # (H, H)
    wfused_t = jnp.concatenate([jnp.zeros_like(w_cross_t), w_cross_t], 0)  # (2H, H)

    # fused hand_craft|readability MLP weight (matches torch.cat order [cross, hand, read])
    whr_t = jnp.concatenate([params["wm_h"].T, params["wm_r"].T], axis=0)  # (86, H)

    # fused bias: bm + bo@wm_c.T + bv@wo.T@wm_c.T
    b_fused = (params["bm"]
               + jnp.dot(params["bo"], params["wm_c"].T, precision=hp)
               + jnp.dot(params["bv"], w_cross_t, precision=hp))           # (1, H)
    b_fused_pad = jnp.concatenate(
        [b_fused, jnp.zeros((1, H), b_fused.dtype)], axis=1)               # (1, 2H)
    bias_slab = jnp.concatenate([bq2, b_fused_pad], axis=0)                # (2, 2H)

    return {"wq2_t": wq2_t, "wkv_t": wkv_t, "p2": P2,
            "wfused_t": wfused_t, "whr_t": whr_t, "bias": bias_slab}


# ---------------------------------------------------------------------------
# pallas_call wrapper
# ---------------------------------------------------------------------------
def multi_trait_forward(doc_fea, chunk_fea, readability, hand_craft, prepared):
    B, H = doc_fea.shape

    # single fused "hand|read" activation (order matches torch.cat([cross, hand, read]))
    hr = jnp.concatenate([hand_craft, readability], axis=-1)               # (B, 86)

    # batch tiling: parallel grid (2 TCs on v7x) when B is a multiple of 8;
    # otherwise one full-batch block (the tiny test case).
    tb = 8 if (B % 8 == 0) else B
    grid = (B // tb,)

    weights = (prepared["wq2_t"], prepared["wkv_t"], prepared["p2"],
               prepared["wfused_t"], prepared["whr_t"], prepared["bias"])

    def batch_spec(shape):
        nd = len(shape)
        return pl.BlockSpec((tb,) + tuple(shape[1:]),
                            lambda i, nd=nd: (i,) + (0,) * (nd - 1))

    def weight_spec(w):
        nd = w.ndim
        return pl.BlockSpec(w.shape, lambda i, nd=nd: (0,) * nd)

    in_specs = ([batch_spec(doc_fea.shape),
                 batch_spec(chunk_fea.shape),
                 batch_spec(hr.shape)]
                + [weight_spec(w) for w in weights])

    return pl.pallas_call(
        multi_trait_kernel,
        grid=grid,
        in_specs=in_specs,
        out_specs=pl.BlockSpec((tb, H), lambda i: (i, 0)),
        out_shape=jax.ShapeDtypeStruct((B, H), jnp.float32),
        compiler_params=pltpu.CompilerParams(
            dimension_semantics=("parallel",)),
    )(doc_fea, chunk_fea, hr, *weights)


# ---------------------------------------------------------------------------
# Plain-JAX reference (faithful to torch.nn.MultiheadAttention + mlp, eval mode)
# ---------------------------------------------------------------------------
def multi_trait_reference(doc_fea, chunk_fea, readability, hand_craft, params, num_heads):
    B, H = doc_fea.shape
    S = chunk_fea.shape[1]
    hd = H // num_heads
    q = doc_fea @ params["wq"].T + params["bq"][0]
    k = chunk_fea @ params["wk"].T + params["bk"][0]
    v = chunk_fea @ params["wv"].T + params["bv"][0]
    qh = q.reshape(B, num_heads, hd)
    kh = k.reshape(B, S, num_heads, hd)
    vh = v.reshape(B, S, num_heads, hd)
    logits = jnp.einsum("bhd,bshd->bhs", qh, kh) / jnp.sqrt(hd).astype(jnp.float32)
    probs = jax.nn.softmax(logits, axis=-1)
    attn = jnp.einsum("bhs,bshd->bhd", probs, vh).reshape(B, H)
    cross = attn @ params["wo"].T + params["bo"][0]
    cat = jnp.concatenate([cross, hand_craft, readability], axis=-1)
    wm = jnp.concatenate([params["wm_c"], params["wm_h"], params["wm_r"]], axis=1)
    return jax.nn.relu(cat @ wm.T + params["bm"][0])


def init_params(key, hidden_dim):
    ks = jax.random.split(key, 12)
    s = 0.1
    dim_r, dim_h = 34, 52
    return {
        "wq": s * jax.random.normal(ks[0], (hidden_dim, hidden_dim), jnp.float32),
        "wk": s * jax.random.normal(ks[1], (hidden_dim, hidden_dim), jnp.float32),
        "wv": s * jax.random.normal(ks[2], (hidden_dim, hidden_dim), jnp.float32),
        "bq": s * jax.random.normal(ks[3], (1, hidden_dim), jnp.float32),
        "bk": s * jax.random.normal(ks[4], (1, hidden_dim), jnp.float32),
        "bv": s * jax.random.normal(ks[5], (1, hidden_dim), jnp.float32),
        "wo": s * jax.random.normal(ks[6], (hidden_dim, hidden_dim), jnp.float32),
        "bo": s * jax.random.normal(ks[7], (1, hidden_dim), jnp.float32),
        # mlp Linear(hidden_dim + 86, hidden_dim), split along input features:
        #   [cross_fea (H) | hand_craft (52) | readability (34)]
        "wm_c": s * jax.random.normal(ks[8], (hidden_dim, hidden_dim), jnp.float32),
        "wm_h": s * jax.random.normal(ks[9], (hidden_dim, dim_h), jnp.float32),
        "wm_r": s * jax.random.normal(ks[10], (hidden_dim, dim_r), jnp.float32),
        "bm": s * jax.random.normal(ks[11], (1, hidden_dim), jnp.float32),
    }


if __name__ == "__main__":
    B, S, H, NH = 2, 8, 32, 4  # batch, chunk seq len, hidden_dim, mhd_head

    key = jax.random.PRNGKey(0)
    k_in, k_p = jax.random.split(key)
    ki = jax.random.split(k_in, 8)

    doc_fea = jax.random.normal(ki[0], (B, H), jnp.float32)
    chunk_fea = jax.random.normal(ki[1], (B, S, H), jnp.float32)
    readability = jax.random.normal(ki[2], (B, 34), jnp.float32)
    hand_craft = jax.random.normal(ki[3], (B, 52), jnp.float32)
    # p* inputs exist in the module signature but are unused by forward; built for parity.
    pdoc_fea = jax.random.normal(ki[4], (B, H), jnp.float32)
    pchunk_fea = jax.random.normal(ki[5], (B, S, H), jnp.float32)
    preadability = jax.random.normal(ki[6], (B, 34), jnp.float32)
    phand_craft = jax.random.normal(ki[7], (B, 52), jnp.float32)

    params = init_params(k_p, H)
    prepared = prepare_params(params, NH, H)

    out = multi_trait_forward(doc_fea, chunk_fea, readability, hand_craft, prepared)
    out = jax.block_until_ready(out)

    ref = multi_trait_reference(doc_fea, chunk_fea, readability, hand_craft, params, NH)
    assert out.shape == (B, H)
    assert jnp.allclose(out, ref, atol=2e-4, rtol=2e-4), "mismatch vs JAX reference"

    print("KERNEL_OK")
</pallas_src>

<mosaic_0001>
module attributes {stable_mosaic.version = 11 : i64} {
  func.func @multi_trait_kernel(%arg0: i32, %arg1: memref<2x32xf32, #tpu.memory_space<vmem>>, %arg2: memref<2x8x32xf32, #tpu.memory_space<vmem>>, %arg3: memref<2x86xf32, #tpu.memory_space<vmem>>, %arg4: memref<32x64xf32, #tpu.memory_space<vmem>>, %arg5: memref<32x64xf32, #tpu.memory_space<vmem>>, %arg6: memref<64x64xf32, #tpu.memory_space<vmem>>, %arg7: memref<64x32xf32, #tpu.memory_space<vmem>>, %arg8: memref<86x32xf32, #tpu.memory_space<vmem>>, %arg9: memref<2x64xf32, #tpu.memory_space<vmem>>, %arg10: memref<2x32xf32, #tpu.memory_space<vmem>>) attributes {dimension_semantics = [#tpu.dimension_semantics<parallel>], iteration_bounds = array<i64: 1>, scalar_prefetch = 0 : i64, scratch_operands = 0 : i64, tpu.core_type = #tpu.core_type<tc>, window_params = [{transform_indices = @transform_0, window_bounds = array<i64: 2, 32>}, {transform_indices = @transform_1, window_bounds = array<i64: 2, 8, 32>}, {transform_indices = @transform_2, window_bounds = array<i64: 2, 86>}, {pipeline_mode = #tpu.pipeline_mode<synchronous>, transform_indices = @transform_3, window_bounds = array<i64: 32, 64>}, {pipeline_mode = #tpu.pipeline_mode<synchronous>, transform_indices = @transform_4, window_bounds = array<i64: 32, 64>}, {pipeline_mode = #tpu.pipeline_mode<synchronous>, transform_indices = @transform_5, window_bounds = array<i64: 64, 64>}, {pipeline_mode = #tpu.pipeline_mode<synchronous>, transform_indices = @transform_6, window_bounds = array<i64: 64, 32>}, {pipeline_mode = #tpu.pipeline_mode<synchronous>, transform_indices = @transform_7, window_bounds = array<i64: 86, 32>}, {pipeline_mode = #tpu.pipeline_mode<synchronous>, transform_indices = @transform_8, window_bounds = array<i64: 2, 64>}, {transform_indices = @transform_9, window_bounds = array<i64: 2, 32>}]} {
    %c0 = arith.constant 0 : index
    %c0_0 = arith.constant 0 : index
    %0 = vector.load %arg1[%c0, %c0_0] : memref<2x32xf32, #tpu.memory_space<vmem>>, vector<2x32xf32>
    %c0_1 = arith.constant 0 : index
    %c0_2 = arith.constant 0 : index
    %c0_3 = arith.constant 0 : index
    %1 = vector.load %arg2[%c0_1, %c0_2, %c0_3] : memref<2x8x32xf32, #tpu.memory_space<vmem>>, vector<2x8x32xf32>
    %2 = vector.shape_cast %1 : vector<2x8x32xf32> to vector<16x32xf32>
    %c0_4 = arith.constant 0 : index
    %c0_5 = arith.constant 0 : index
    %3 = vector.load %arg4[%c0_4, %c0_5] : memref<32x64xf32, #tpu.memory_space<vmem>>, vector<32x64xf32>
    %cst = arith.constant dense<0.000000e+00> : vector<2x64xf32>
    %4 = tpu.matmul %0, %3, %cst {dimension_numbers = #tpu.dot_dimension_numbers<[1], [0], [0], [1], [0, 0, 1, 1], [], []>} : vector<2x32xf32>, vector<32x64xf32>, vector<2x64xf32> -> vector<2x64xf32>
    %c0_6 = arith.constant 0 : index
    %c0_7 = arith.constant 0 : index
    %5 = vector.load %arg9[%c0_6, %c0_7] : memref<2x64xf32, #tpu.memory_space<vmem>>, vector<1x64xf32>
    %6 = vector.broadcast %5 : vector<1x64xf32> to vector<2x64xf32>
    %7 = arith.addf %4, %6 : vector<2x64xf32>
    %c0_8 = arith.constant 0 : index
    %c0_9 = arith.constant 0 : index
    %8 = vector.load %arg5[%c0_8, %c0_9] : memref<32x64xf32, #tpu.memory_space<vmem>>, vector<32x64xf32>
    %cst_10 = arith.constant dense<0.000000e+00> : vector<16x64xf32>
    %9 = tpu.matmul %2, %8, %cst_10 {dimension_numbers = #tpu.dot_dimension_numbers<[1], [0], [0], [1], [0, 0, 1, 1], [], []>} : vector<16x32xf32>, vector<32x64xf32>, vector<16x64xf32> -> vector<16x64xf32>
    %10 = vector.shape_cast %9 : vector<16x64xf32> to vector<2x8x64xf32>
    %11 = vector.shape_cast %7 : vector<2x64xf32> to vector<2x1x64xf32>
    %12 = vector.broadcast %11 : vector<2x1x64xf32> to vector<2x8x64xf32>
    %13 = arith.mulf %12, %10 : vector<2x8x64xf32>
    %14 = vector.shape_cast %13 : vector<2x8x64xf32> to vector<16x64xf32>
    %c0_11 = arith.constant 0 : index
    %c0_12 = arith.constant 0 : index
    %15 = vector.load %arg6[%c0_11, %c0_12] : memref<64x64xf32, #tpu.memory_space<vmem>>, vector<64x64xf32>
    %cst_13 = arith.constant dense<0.000000e+00> : vector<16x64xf32>
    %16 = tpu.matmul %14, %15, %cst_13 {dimension_numbers = #tpu.dot_dimension_numbers<[1], [0], [0], [1], [0, 0, 1, 1], [], []>} : vector<16x64xf32>, vector<64x64xf32>, vector<16x64xf32> -> vector<16x64xf32>
    %17 = vector.shape_cast %16 : vector<16x64xf32> to vector<2x8x64xf32>
    %cst_14 = arith.constant dense<0xFF800000> : vector<2x64xf32>
    %18 = vector.multi_reduction <maximumf>, %17, %cst_14 [1] : vector<2x8x64xf32> to vector<2x64xf32>
    %19 = vector.shape_cast %18 : vector<2x64xf32> to vector<2x1x64xf32>
    %20 = vector.broadcast %19 : vector<2x1x64xf32> to vector<2x8x64xf32>
    %21 = arith.subf %17, %20 : vector<2x8x64xf32>
    %22 = math.exp %21 : vector<2x8x64xf32>
    %cst_15 = arith.constant dense<0.000000e+00> : vector<2x64xf32>
    %23 = vector.multi_reduction <add>, %22, %cst_15 [1] : vector<2x8x64xf32> to vector<2x64xf32>
    %24 = vector.shape_cast %23 : vector<2x64xf32> to vector<2x1x64xf32>
    %25 = vector.broadcast %24 : vector<2x1x64xf32> to vector<2x8x64xf32>
    %26 = arith.divf %22, %25 : vector<2x8x64xf32>
    %27 = arith.mulf %26, %10 : vector<2x8x64xf32>
    %cst_16 = arith.constant dense<0.000000e+00> : vector<2x64xf32>
    %28 = vector.multi_reduction <add>, %27, %cst_16 [1] : vector<2x8x64xf32> to vector<2x64xf32>
    %c0_17 = arith.constant 0 : index
    %c0_18 = arith.constant 0 : index
    %29 = vector.load %arg7[%c0_17, %c0_18] : memref<64x32xf32, #tpu.memory_space<vmem>>, vector<64x32xf32>
    %cst_19 = arith.constant dense<0.000000e+00> : vector<2x32xf32>
    %30 = tpu.matmul %28, %29, %cst_19 {dimension_numbers = #tpu.dot_dimension_numbers<[1], [0], [0], [1], [0, 0, 1, 1], [], []>} : vector<2x64xf32>, vector<64x32xf32>, vector<2x32xf32> -> vector<2x32xf32>
    %c0_20 = arith.constant 0 : index
    %c0_21 = arith.constant 0 : index
    %31 = vector.load %arg3[%c0_20, %c0_21] : memref<2x86xf32, #tpu.memory_space<vmem>>, vector<2x86xf32>
    %c0_22 = arith.constant 0 : index
    %c0_23 = arith.constant 0 : index
    %32 = vector.load %arg8[%c0_22, %c0_23] : memref<86x32xf32, #tpu.memory_space<vmem>>, vector<86x32xf32>
    %cst_24 = arith.constant dense<0.000000e+00> : vector<2x32xf32>
    %33 = tpu.matmul %31, %32, %cst_24 {dimension_numbers = #tpu.dot_dimension_numbers<[1], [0], [0], [1], [0, 0, 1, 1], [], []>} : vector<2x86xf32>, vector<86x32xf32>, vector<2x32xf32> -> vector<2x32xf32>
    %34 = arith.addf %30, %33 : vector<2x32xf32>
    %c1 = arith.constant 1 : index
    %c0_25 = arith.constant 0 : index
    %35 = vector.load %arg9[%c1, %c0_25] : memref<2x64xf32, #tpu.memory_space<vmem>>, vector<1x32xf32>
    %36 = vector.broadcast %35 : vector<1x32xf32> to vector<2x32xf32>
    %37 = arith.addf %34, %36 : vector<2x32xf32>
    %cst_26 = arith.constant 0.000000e+00 : f32
    %38 = vector.broadcast %cst_26 : f32 to vector<2x32xf32>
    %39 = arith.maximumf %37, %38 : vector<2x32xf32>
    %c0_27 = arith.constant 0 : index
    %c0_28 = arith.constant 0 : index
    %40 = vector.load %arg10[%c0_27, %c0_28] : memref<2x32xf32, #tpu.memory_space<vmem>>, vector<2x32xf32>
    tpu.vector_store %arg10[%c0_27, %c0_28], %39 {strides = array<i32>} : memref<2x32xf32, #tpu.memory_space<vmem>>, vector<2x32xf32>,
    return
  }
  func.func @transform_0(%arg0: i32) -> (i32, i32) {
    %c0_i32 = arith.constant 0 : i32
    %c0_i32_0 = arith.constant 0 : i32
    return %arg0, %c0_i32 : i32, i32
  }
  func.func @transform_1(%arg0: i32) -> (i32, i32, i32) {
    %c0_i32 = arith.constant 0 : i32
    %c0_i32_0 = arith.constant 0 : i32
    %c0_i32_1 = arith.constant 0 : i32
    return %arg0, %c0_i32, %c0_i32_0 : i32, i32, i32
  }
  func.func @transform_2(%arg0: i32) -> (i32, i32) {
    %c0_i32 = arith.constant 0 : i32
    %c0_i32_0 = arith.constant 0 : i32
    return %arg0, %c0_i32 : i32, i32
  }
  func.func @transform_3(%arg0: i32) -> (i32, i32) {
    %c0_i32 = arith.constant 0 : i32
    %c0_i32_0 = arith.constant 0 : i32
    %c0_i32_1 = arith.constant 0 : i32
    return %c0_i32, %c0_i32_0 : i32, i32
  }
  func.func @transform_4(%arg0: i32) -> (i32, i32) {
    %c0_i32 = arith.constant 0 : i32
    %c0_i32_0 = arith.constant 0 : i32
    %c0_i32_1 = arith.constant 0 : i32
    return %c0_i32, %c0_i32_0 : i32, i32
  }
  func.func @transform_5(%arg0: i32) -> (i32, i32) {
    %c0_i32 = arith.constant 0 : i32
    %c0_i32_0 = arith.constant 0 : i32
    %c0_i32_1 = arith.constant 0 : i32
    return %c0_i32, %c0_i32_0 : i32, i32
  }
  func.func @transform_6(%arg0: i32) -> (i32, i32) {
    %c0_i32 = arith.constant 0 : i32
    %c0_i32_0 = arith.constant 0 : i32
    %c0_i32_1 = arith.constant 0 : i32
    return %c0_i32, %c0_i32_0 : i32, i32
  }
  func.func @transform_7(%arg0: i32) -> (i32, i32) {
    %c0_i32 = arith.constant 0 : i32
    %c0_i32_0 = arith.constant 0 : i32
    %c0_i32_1 = arith.constant 0 : i32
    return %c0_i32, %c0_i32_0 : i32, i32
  }
  func.func @transform_8(%arg0: i32) -> (i32, i32) {
    %c0_i32 = arith.constant 0 : i32
    %c0_i32_0 = arith.constant 0 : i32
    %c0_i32_1 = arith.constant 0 : i32
    return %c0_i32, %c0_i32_0 : i32, i32
  }
  func.func @transform_9(%arg0: i32) -> (i32, i32) {
    %c0_i32 = arith.constant 0 : i32
    %c0_i32_0 = arith.constant 0 : i32
    return %arg0, %c0_i32 : i32, i32
  }
}

</mosaic_0001>

<bundles_post_ra>
// kernel: tpu_custom_call.1
= control target key start
LH: loop header
LB: loop body
LE: loop exit
PB: predicated region body
PF: predicated region fallthrough
CT: control target
= control target key end

     0   :  { %vm42_vm0 = vcmask 261120   ;;  %s568_s0 = inlined_call_operand.vmem [shape: f32[2,32], index: 0, kind: input, shape index: {}]   ;;  %s569_s1 = inlined_call_operand.vmem [shape: f32[2,8,32], index: 1, kind: input, shape index: {}]   ;;  %s570_s2 = inlined_call_operand.vmem [shape: f32[2,86], index: 2, kind: input, shape index: {}]   ;;  %s571_s3 = inlined_call_operand.vmem [shape: f32[32,64], index: 3, kind: input, shape index: {}]   ;;  %s572_s4 = inlined_call_operand.vmem [shape: f32[32,64], index: 4, kind: input, shape index: {}]   ;;  %s573_s5 = inlined_call_operand.vmem [shape: f32[64,64], index: 5, kind: input, shape index: {}]   ;;  %s574_s6 = inlined_call_operand.vmem [shape: f32[64,32], index: 6, kind: input, shape index: {}]   ;;  %s575_s7 = inlined_call_operand.vmem [shape: f32[86,32], index: 7, kind: input, shape index: {}]   ;;  %s576_s8 = inlined_call_operand.vmem [shape: f32[2,64], index: 8, kind: input, shape index: {}]   ;;  %s577_s9 = inlined_call_operand.hbm [shape: f32[2,32], index: 9, kind: output, shape index: {}]  }
   0x1   :  { %v39_v0 = vld [vmem:[%s571_s3 + $0x18] sm:$0xff]  ;;  %v38_v2 = vld [vmem:[%s571_s3 + $0x10] sm:$0xff]  ;;  %v37_v4 = vld [vmem:[%s571_s3 + $0x8] sm:$0xff] }
   0x2   :  { %v69_v1 = vld [vmem:[%s572_s4 + $0x18] sm:$0xff]  ;;  %58 = vmatpush.msra.mxu0 %v39_v0  ;;  %v68_v3 = vld [vmem:[%s572_s4 + $0x10] sm:$0xff]  ;;  %v67_v5 = vld [vmem:[%s572_s4 + $0x8] sm:$0xff] }
   0x3   :  { %88 = vmatpush.msra.mxu1 %v69_v1  ;;  %v36_v6 = vld [vmem:[%s571_s3] sm:$0xff]  ;;  %v114_v7 = vld [vmem:[%s573_s5 + $0x38] sm:$0xff]  ;;  %v113_v10 = vld [vmem:[%s573_s5 + $0x30] sm:$0xff] }
   0x4   :  { %59 = vmatpush.msra.mxu0 %v38_v2  ;;  %v66_v8 = vld [vmem:[%s572_s4] sm:$0xff]  ;;  %130 = vmatpush.msra.mxu2 %v114_v7  ;;  %v112_v12 = vld [vmem:[%s573_s5 + $0x28] sm:$0xff] }
   0x5   :  { %89 = vmatpush.msra.mxu1 %v68_v3  ;;  %v33_v9 = vld [vmem:[%s568_s0] sm:$0x3] }
   0x6   :  { %60 = vmatpush.msra.mxu0 %v37_v4  ;;  %v34_v11 = vld [vmem:[%s569_s1] sm:$0xff]  ;;  %131 = vmatpush.msra.mxu2 %v113_v10 }
   0x7   :  { %90 = vmatpush.msra.mxu1 %v67_v5 }
   0x8   :  { %14 = vsyncpa [#allocation3], 0  ;;  %61 = vmatpush.msra.mxu0 %v36_v6  ;;  %v111_v13 = vld [vmem:[%s573_s5 + $0x20] sm:$0xff]  ;;  %132 = vmatpush.msra.mxu2 %v112_v12  ;;  %v35_v14 = vld [vmem:[%s569_s1 + $0x8] sm:$0xff]  ;;  %vm115_vm1 = vcmask 523264   ;;  %vm249_vm2 = vcmask 1045504  }
   0x9   :  { %91 = vmatpush.msra.mxu1 %v66_v8  ;;  %321 = vmatmul.msk.f32.vlgmr.msra.gmra.mxu0 %vm42_vm0, %v33_v9  ;;  %v110_v15 = vld [vmem:[%s573_s5 + $0x18] sm:$0xff]  ;;  %v109_v16 = vld [vmem:[%s573_s5 + $0x10] sm:$0xff]  ;;  %v108_v17 = vld [vmem:[%s573_s5 + $0x8] sm:$0xff]  ;;  %vm245_vm3 = vcmask 703488   ;;  %vm275_vm12 = vcmask 1041409   ;;  %s366_s4 = smov [#allocation2]  }
   0xa   :  { %322 = vmatmul.msk.f32.vlgmr.msra.gmra.mxu1 %vm42_vm0, %v34_v11  ;;  %133 = vmatpush.msra.mxu2 %v111_v13  ;;  %v107_v18 = vld [vmem:[%s573_s5] sm:$0xff]  ;;  %v244_v48 = vld [vmem:[%s575_s7 + $0x50] sm:$0x3f]  ;;  %v243_v52 = vld [vmem:[%s575_s7 + $0x48] sm:$0xff]  ;;  %s310_s13 = sshll.u32 %s366_s4, 4  ;;  %s312_s16 = sshll.u32 %s577_s9, 4  ;;  %s311_s13 = int_to_ptr.vmem [resolvable:$true] %s310_s13  ;;  %s313_s16 = int_to_ptr.hbm [resolvable:$true] %s312_s16 }
   0xb   :  { %v330_v19 = vld [vmem:[%s576_s8] ss:$0 sm:$0xff]  ;;  %326 = vmatpush.msk.msra.mxu3 %vm249_vm2, %v244_v48  ;;  %v241_v56 = vld [vmem:[%s575_s7 + $0x38] sm:$0xff]  ;;  %v240_v58 = vld [vmem:[%s575_s7 + $0x30] sm:$0xff]  ;;  %vm303_vm13 = vcmask 254976  }
   0xc   :  { %134 = vmatpush.msra.mxu2 %v110_v15  ;;  %v242_v54 = vld [vmem:[%s575_s7 + $0x40] sm:$0xff]  ;;  %v239_v62 = vld [vmem:[%s575_s7 + $0x28] sm:$0xff]  ;;  %v232_v2 = vld [vmem:[%s574_s6 + $0x38] sm:$0xff] }
   0xd   :  { %259 = vmatpush.msra.mxu3 %v243_v52  ;;  %v238_v1 = vld [vmem:[%s575_s7 + $0x20] sm:$0xff]  ;;  %287 = vmatpush.msrb.mxu0 %v232_v2  ;;  %v237_v5 = vld [vmem:[%s575_s7 + $0x18] sm:$0xff]  ;;  %v231_v6 = vld [vmem:[%s574_s6 + $0x30] sm:$0xff] }
   0xe   :  { %135 = vmatpush.msra.mxu2 %v109_v16  ;;  %v236_v7 = vld [vmem:[%s575_s7 + $0x10] sm:$0xff]  ;;  %v230_v8 = vld [vmem:[%s574_s6 + $0x28] sm:$0xff]  ;;  %v229_v11 = vld [vmem:[%s574_s6 + $0x20] sm:$0xff] }
   0xf   :  { %260 = vmatpush.msra.mxu3 %v242_v54  ;;  %288 = vmatpush.msrb.mxu0 %v231_v6  ;;  %v235_v10 = vld [vmem:[%s575_s7 + $0x8] sm:$0xff]  ;;  %v234_v13 = vld [vmem:[%s575_s7] sm:$0xff] }
  0x10   :  { %136 = vmatpush.msra.mxu2 %v108_v17  ;;  %v233_v15 = vld [vmem:[%s570_s2] sm:$0x3]  ;;  %v227_v17 = vld [vmem:[%s574_s6 + $0x10] sm:$0xff] }
  0x11   :  { %261 = vmatpush.msra.mxu3 %v241_v56  ;;  %289 = vmatpush.msrb.mxu0 %v230_v8 }
  0x12   :  { %323 = vmatmul.msk.f32.gmra.mxu1 %vm42_vm0, %v35_v14  ;;  %137 = vmatpush.msra.mxu2 %v107_v18  ;;  %v228_v14 = vld [vmem:[%s574_s6 + $0x18] sm:$0xff] }
  0x13   :  { %262 = vmatpush.msra.mxu3 %v240_v58  ;;  %290 = vmatpush.msrb.mxu0 %v229_v11 }
  0x15   :  { %263 = vmatpush.msra.mxu3 %v239_v62  ;;  %291 = vmatpush.msrb.mxu0 %v228_v14 }
  0x17   :  { %264 = vmatpush.msra.mxu3 %v238_v1  ;;  %292 = vmatpush.msrb.mxu0 %v227_v17 }
  0x19   :  { %265 = vmatpush.msra.mxu3 %v237_v5 }
  0x1b   :  { %266 = vmatpush.msra.mxu3 %v236_v7 }
  0x1d   :  { %267 = vmatpush.msra.mxu3 %v235_v10 }
  0x1f   :  { %268 = vmatpush.msra.mxu3 %v234_v13 }
  0x20   :  { %327 = vmatmul.msk.f32.vlgmr.msra.gmra.mxu3 %vm245_vm3, %v233_v15 }
  0x86   :  { %v63_v20 = vpop.f32.mrf.mxu0 }
  0x87   :  { %v477_v21 = vpop.f32.mrf.mxu1  ;;  %v64_v22 = vadd.f32 %v330_v19, %v63_v20 }
  0x89   :  { %v101_v23 = vperm.slane %v64_v22, 0  ;;  %v100_v25 = vrot.slane %v64_v22, 1  ;;  %v226_v22 = vld [vmem:[%s574_s6 + $0x8] sm:$0xff] }
  0x8a   :  { %293 = vmatpush.msrb.mxu0 %v226_v22 }
  0x8b   :  { %v105_v24 = vmul.f32 %v101_v23, %v477_v21  ;;  %v102_v27 = vperm.slane %v100_v25, 0 }
  0x8d   :  { %324 = vmatmul.msk.f32.vlgmr.msra.gmra.mxu2 %vm115_vm1, %v105_v24  ;;  %v225_v24 = vld [vmem:[%s574_s6] sm:$0xff] }
  0x8e   :  { %294 = vmatpush.msrb.mxu0 %v225_v24 }
  0x8f   :  { %v481_v26 = vpop.f32.mrf.mxu1 }
  0x90   :  { %v106_v28 = vmul.f32 %v102_v27, %v481_v26 }
  0x95   :  { %325 = vmatmul.msk.f32.gmra.mxu2 %vm115_vm1, %v106_v28 }
  0xa3   :  { %v270_v62 = vpop.f32.mrf.mxu3 }
 0x110   :  { %v139_v29 = vpop.f32.mrf.mxu2 }
 0x111   :  { %v145_v30 = vsel %vm115_vm1, %v139_v29, -inf }
 0x112   :  { %v146_v31 = vrot.slane %v145_v30, 4 }
 0x114   :  { %v147_v32 = vmax.f32 %v145_v30, %v146_v31 }
 0x116   :  { %v148_v33 = vrot.slane %v147_v32, 2 }
 0x118   :  { %v149_v34 = vmax.f32 %v147_v32, %v148_v33  ;;  %v142_v35 = vpop.f32.mrf.mxu2 }
 0x119   :  { %v152_v36 = vsel %vm115_vm1, %v142_v35, -inf }
 0x11a   :  { %v150_v37 = vrot.slane %v149_v34, 1  ;;  %v153_v38 = vrot.slane %v152_v36, 4 }
 0x11c   :  { %v151_v39 = vmax.f32 %v149_v34, %v150_v37  ;;  %v154_v40 = vmax.f32 %v152_v36, %v153_v38 }
 0x11e   :  { %v159_v41 = vsub.f32 %v139_v29, %v151_v39  ;;  %v155_v42 = vrot.slane %v154_v40, 2 }
 0x120   :  { %v161_v43 = vmul.f32 1.442695, %v159_v41  ;;  %v156_v44 = vmax.f32 %v154_v40, %v155_v42 }
 0x122   :  { %332 = vpow2.f32 %v161_v43  ;;  %v157_v45 = vrot.slane %v156_v44, 1 }
 0x124   :  { %v158_v46 = vmax.f32 %v156_v44, %v157_v45 }
 0x126   :  { %v160_v47 = vsub.f32 %v142_v35, %v158_v46 }
 0x128   :  { %v490_v49 = vpop.eup %332  ;;  %v163_v50 = vmul.f32 1.442695, %v160_v47 }
 0x129   :  { %v165_v51 = vsel %vm115_vm1, %v490_v49, 0.0 }
 0x12a   :  { %v166_v53 = vrot.slane %v165_v51, 4  ;;  %334 = vpow2.f32 %v163_v50 }
 0x12c   :  { %v167_v55 = vadd.f32 %v166_v53, %v165_v51 }
 0x12e   :  { %v168_v57 = vrot.slane %v167_v55, 2 }
 0x130   :  { %v506_v59 = vpop.eup %334  ;;  %v169_v60 = vadd.f32 %v168_v57, %v167_v55 }
 0x131   :  { %v172_v61 = vsel %vm115_vm1, %v506_v59, 0.0 }
 0x132   :  { %v170_v63 = vrot.slane %v169_v60, 1  ;;  %v173_v0 = vrot.slane %v172_v61, 4 }
 0x134   :  { %v171_v3 = vadd.f32 %v170_v63, %v169_v60  ;;  %v174_v4 = vadd.f32 %v173_v0, %v172_v61 }
 0x136   :  { %336 = vrcp.f32 %v171_v3  ;;  %v175_v9 = vrot.slane %v174_v4, 2  ;;  %v190_v25 = vand.u32 2147483648, %v171_v3  ;;  %v188_v28 = vand.u32 2147483647, %v171_v3 }
 0x137   :  { %vm184_vm5 = vweird.f32 %v171_v3 }
 0x138   :  { %v176_v12 = vadd.f32 %v175_v9, %v174_v4  ;;  %v191_v30 = vor.u32 1.1754944e-38, %v190_v25  ;;  %vm189_vm7 = vcmp.eq.f32.partialorder %v188_v28, 8.507059e+37 }
 0x13a   :  { %v177_v16 = vrot.slane %v176_v12, 1 }
 0x13c   :  { %v337_v18 = vpop.eup %336  ;;  %v178_v20 = vadd.f32 %v177_v16, %v176_v12 }
 0x13d   :  { %v180_v19 = vmul.f32 %v337_v18, %v171_v3  ;;  %vm185_vm4 = vweird.f32 %v337_v18 }
 0x13e   :  { %338 = vrcp.f32 %v178_v20  ;;  %vm186_vm6 = vmor %vm184_vm5, %vm185_vm4  ;;  %v205_v38 = vand.u32 2147483648, %v178_v20  ;;  %v203_v40 = vand.u32 2147483647, %v178_v20  ;;  %vm199_vm9 = vweird.f32 %v178_v20 }
 0x13f   :  { %v181_v23 = vsub.f32 1.0, %v180_v19 }
 0x140   :  { %v206_v44 = vor.u32 1.1754944e-38, %v205_v38  ;;  %vm204_vm11 = vcmp.eq.f32.partialorder %v203_v40, 8.507059e+37 }
 0x141   :  { %v182_v27 = vmul.f32 %v337_v18, %v181_v23 }
 0x143   :  { %v183_v29 = vadd.f32 %v337_v18, %v182_v27 }
 0x144   :  { %v339_v31 = vpop.eup %338 }
 0x145   :  { %v187_v32 = vsel %vm186_vm6, %v337_v18, %v183_v29  ;;  %v195_v34 = vmul.f32 %v339_v31, %v178_v20  ;;  %vm200_vm8 = vweird.f32 %v339_v31 }
 0x146   :  { %v192_v33 = vsel %vm189_vm7, %v191_v30, %v187_v32  ;;  %vm201_vm10 = vmor %vm199_vm9, %vm200_vm8 }
 0x147   :  { %v193_v35 = vmul.f32 %v490_v49, %v192_v33  ;;  %v196_v36 = vsub.f32 1.0, %v195_v34 }
 0x149   :  { %v209_v37 = vmul.f32 %v193_v35, %v477_v21  ;;  %v197_v39 = vmul.f32 %v339_v31, %v196_v36 }
 0x14b   :  { %v211_v41 = vsel %vm115_vm1, %v209_v37, 0.0  ;;  %v198_v42 = vadd.f32 %v339_v31, %v197_v39 }
 0x14c   :  { %v212_v43 = vrot.slane %v211_v41, 4 }
 0x14d   :  { %v202_v45 = vsel %vm201_vm10, %v339_v31, %v198_v42 }
 0x14e   :  { %v207_v46 = vsel %vm204_vm11, %v206_v44, %v202_v45  ;;  %v213_v47 = vadd.f32 %v212_v43, %v211_v41 }
 0x14f   :  { %v208_v48 = vmul.f32 %v506_v59, %v207_v46 }
 0x150   :  { %v214_v21 = vrot.slane %v213_v47, 2 }
 0x151   :  { %v210_v49 = vmul.f32 %v208_v48, %v481_v26  ;;  %v331_v26 = vld [vmem:[%s576_s8 + $0x1] ss:$0 sm:$0xff] }
 0x152   :  { %v215_v52 = vadd.f32 %v214_v21, %v213_v47 }
 0x153   :  { %v218_v50 = vsel %vm115_vm1, %v210_v49, 0.0 }
 0x154   :  { %v219_v51 = vrot.slane %v218_v50, 4  ;;  %v216_v55 = vrot.slane %v215_v52, 1 }
 0x156   :  { %v220_v53 = vadd.f32 %v219_v51, %v218_v50  ;;  %v217_v58 = vadd.f32 %v216_v55, %v215_v52 }
 0x158   :  { %v221_v54 = vrot.slane %v220_v53, 2 }
 0x15a   :  { %v222_v56 = vadd.f32 %v221_v54, %v220_v53 }
 0x15c   :  { %v223_v57 = vrot.slane %v222_v56, 1 }
 0x15e   :  { %v224_v60 = vadd.f32 %v223_v57, %v222_v56 }
 0x160   :  { %v276_v61 = vsel %vm275_vm12, %v224_v60, %v217_v58 }
 0x161   :  { %328 = vmatmul.msk.f32.vlgmr.msrb.gmra.mxu0 %vm115_vm1, %v276_v61 }
 0x1de   :  { %v296_v59 = vpop.f32.mrf.mxu0 }
 0x1df   :  { %v297_v63 = vadd.f32 %v296_v59, %v270_v62 }
 0x1e1   :  { %v301_v0 = vadd.f32 %v331_v26, %v297_v63 }
 0x1e3   :  { %v302_v1 = vmax.f32 %v301_v0, 0.0 }
 0x1e5   :  { %304 = vst.msk [vmem:[#allocation2] sm:$0x3] %vm303_vm13, %v302_v1 }
 0x1e6   :  { %315 = dma.vmem_to_hbm [thread:$0]  %s311_s13, 32, %s313_s16, [#allocation3]  }
 0x1e7   :  { %364 = dma.done.wait [#allocation3], 32  }
 0x1e8   :  { %365 = vsyncadd [#allocation3], 4294967264 }
 0x1e9   :  { %320 = vsyncpa [#allocation3], 1 }

</bundles_post_ra>
